<compile_context>
chip_gen: v6e
topology: v6e:2x2x1
jax: 0.10.0
libtpu: 0.0.40
codegen_flags: <defaults>
</compile_context>

<pallas_src>
import math
from functools import partial

import jax
import jax.numpy as jnp
from jax import lax
from jax.experimental import pallas as pl
from jax.experimental.pallas import tpu as pltpu


def _conv_kernel(x_ref, w_ref, b_ref, o_ref, patch_ref, *,
                 Cin, Kh, Kw, W, KD, KD_pad, L):
    # x_ref:     (Cin, L)      flattened input; lane index = n*H*W + h*W + w
    # w_ref:     (Cout, KD_pad) per-tap weight rows, zero-padded cols KD..KD_pad
    # b_ref:     (Cout, 1)
    # o_ref:     (Cout, L)     lane-dense output over the full H*W grid
    # patch_ref: (KD_pad, L)   VMEM scratch holding the im2col patch matrix
    xv = x_ref[...]                                      # single load; ~6 vregs

    # Zero only the sublane pad rows so the zero weight columns never multiply
    # uninitialized VMEM (NaN * 0 = NaN).
    if KD_pad > KD:
        patch_ref[KD:, :] = jnp.zeros((KD_pad - KD, L), jnp.float32)

    # Build the patch tile: 9 XLU lane-rolls + 9 sublane-offset stores.
    for kh in range(Kh):
        for kw in range(Kw):
            tap = kh * Kw + kw
            s = kh * W + kw                              # static lane shift of this tap
            # want shifted[:, l] == xv[:, (l + s) % L]  ->  roll by -s (mod L)
            shifted = xv if s == 0 else pltpu.roll(xv, (L - s) % L, axis=1)
            patch_ref[tap * Cin:(tap + 1) * Cin, :] = shifted

    # One MXU contraction: (Cout, KD_pad) x (KD_pad, L) -> (Cout, L), f32 acc.
    out = jnp.dot(w_ref[...], patch_ref[...],
                  preferred_element_type=jnp.float32)
    o_ref[...] = (out + b_ref[...]).astype(o_ref.dtype)


@jax.jit
def conv2d_pallas(x_nchw, weight, bias):
    """Conv2d, stride 1, padding 'VALID', with bias.

    x: (N, Cin, H, W) f32, weight: (Cout, Cin, Kh, Kw), bias: (Cout,)
    Returns (N, Cout, Ho, Wo) f32.
    """
    N, Cin, H, W = x_nchw.shape
    Cout, Cin_w, Kh, Kw = weight.shape
    assert Cin == Cin_w
    Ho, Wo = H - Kh + 1, W - Kw + 1
    # The shifted-window / wraparound trick below is only valid for stride=1,
    # padding='VALID' with the invalid columns cropped AFTER the kernel.
    assert Ho > 0 and Wo > 0

    L = N * H * W
    L_pad = pl.cdiv(L, 128) * 128                        # lane-dense output width
    KD = Kh * Kw * Cin                                   # 27
    KD_pad = pl.cdiv(KD, 8) * 8                          # 32 (sublane aligned)

    # ---- tiny pre-relayout (fused into one XLA copy under jit) ----
    # x -> (Cin, L): lane index = n*H*W + h*W + w
    x_flat = jnp.transpose(x_nchw, (1, 0, 2, 3)).reshape(Cin, L).astype(jnp.float32)
    if L_pad > L:
        x_flat = jnp.pad(x_flat, ((0, 0), (0, L_pad - L)))

    # weight (Cout,Cin,Kh,Kw) -> (Cout, KD_pad); flat k = (kh*Kw + kw)*Cin + cin
    w2 = jnp.transpose(weight, (0, 2, 3, 1)).reshape(Cout, KD).astype(jnp.float32)
    w2 = jnp.pad(w2, ((0, 0), (0, KD_pad - KD)))
    b2 = bias.reshape(Cout, 1).astype(jnp.float32)

    kernel = partial(_conv_kernel, Cin=Cin, Kh=Kh, Kw=Kw, W=W,
                     KD=KD, KD_pad=KD_pad, L=L_pad)

    out_flat = pl.pallas_call(
        kernel,
        out_shape=jax.ShapeDtypeStruct((Cout, L_pad), jnp.float32),
        grid_spec=pltpu.PrefetchScalarGridSpec(
            num_scalar_prefetch=0,
            grid=(1,),                                   # single fused step
            in_specs=[
                pl.BlockSpec((Cin, L_pad), lambda i: (0, 0)),
                pl.BlockSpec((Cout, KD_pad), lambda i: (0, 0)),
                pl.BlockSpec((Cout, 1), lambda i: (0, 0)),
            ],
            out_specs=pl.BlockSpec((Cout, L_pad), lambda i: (0, 0)),
            scratch_shapes=[pltpu.VMEM((KD_pad, L_pad), jnp.float32)],
        ),
        compiler_params=pltpu.CompilerParams(
            dimension_semantics=("arbitrary",),
            # tiny footprint (<0.3 MiB incl. double-buffering); explicit limit
            # keeps us inside v7x's smaller 64 MiB physical / 32 MiB scoped VMEM
            vmem_limit_bytes=16 * 1024 * 1024,
        ),
    )(x_flat, w2, b2)

    # crop the valid (ho < Ho, wo < Wo) positions and restore NCHW
    # (fused into one XLA copy under jit; crop must stay outside the kernel)
    out = out_flat[:, :L].reshape(Cout, N, H, W)[:, :, :Ho, :Wo]
    return jnp.transpose(out, (1, 0, 2, 3))


def init_conv_params(key, cout=6, cin=3, kh=3, kw=3):
    # deterministic init mirroring nn.Conv2d default (uniform +/- 1/sqrt(fan_in))
    kw_key, kb_key = jax.random.split(key)
    fan_in = cin * kh * kw
    bound = 1.0 / math.sqrt(fan_in)
    weight = jax.random.uniform(kw_key, (cout, cin, kh, kw), jnp.float32,
                                minval=-bound, maxval=bound)
    bias = jax.random.uniform(kb_key, (cout,), jnp.float32,
                              minval=-bound, maxval=bound)
    return weight, bias


if __name__ == "__main__":
    key = jax.random.PRNGKey(0)
    k_x, k_p = jax.random.split(key)

    # small NCHW input consistent with Conv2d(in_channels=3, ...)
    x = jax.random.normal(k_x, (2, 3, 16, 16), jnp.float32)
    weight, bias = init_conv_params(k_p)

    out = conv2d_pallas(x, weight, bias)
    out = jax.block_until_ready(out)

    # reference check against XLA conv
    ref = lax.conv_general_dilated(
        x, weight, window_strides=(1, 1), padding="VALID",
        dimension_numbers=("NCHW", "OIHW", "NCHW"),
    ) + bias.reshape(1, -1, 1, 1)

    assert out.shape == (2, 6, 14, 14), out.shape
    # tolerance leaves headroom for chip-dependent MXU f32 pass decomposition;
    # any structural bug (wrong tap shift / index map) produces O(0.5) errors.
    err = float(jnp.max(jnp.abs(out - ref)))
    assert jnp.allclose(out, ref, atol=2e-2, rtol=2e-2), f"mismatch vs reference conv (max err {err})"

    print("KERNEL_OK")
</pallas_src>

<mosaic_0001>
module attributes {stable_mosaic.version = 11 : i64} {
  func.func @_conv_kernel(%arg0: i32, %arg1: memref<3x512xf32, #tpu.memory_space<vmem>>, %arg2: memref<6x32xf32, #tpu.memory_space<vmem>>, %arg3: memref<6x1xf32, #tpu.memory_space<vmem>>, %arg4: memref<6x512xf32, #tpu.memory_space<vmem>>, %arg5: memref<32x512xf32, #tpu.memory_space<vmem>>) attributes {dimension_semantics = [#tpu.dimension_semantics<arbitrary>], iteration_bounds = array<i64: 1>, scalar_prefetch = 0 : i64, scratch_operands = 1 : i64, tpu.core_type = #tpu.core_type<tc>, window_params = [{pipeline_mode = #tpu.pipeline_mode<synchronous>, transform_indices = @transform_0, window_bounds = array<i64: 3, 512>}, {pipeline_mode = #tpu.pipeline_mode<synchronous>, transform_indices = @transform_1, window_bounds = array<i64: 6, 32>}, {pipeline_mode = #tpu.pipeline_mode<synchronous>, transform_indices = @transform_2, window_bounds = array<i64: 6, 1>}, {pipeline_mode = #tpu.pipeline_mode<synchronous>, transform_indices = @transform_3, window_bounds = array<i64: 6, 512>}]} {
    %c0 = arith.constant 0 : index
    %c0_0 = arith.constant 0 : index
    %0 = vector.load %arg1[%c0, %c0_0] : memref<3x512xf32, #tpu.memory_space<vmem>>, vector<3x512xf32>
    %cst = arith.constant 0.000000e+00 : f32
    %1 = vector.broadcast %cst : f32 to vector<5x512xf32>
    %c27 = arith.constant 27 : index
    %c0_1 = arith.constant 0 : index
    %2 = vector.load %arg5[%c27, %c0_1] : memref<32x512xf32, #tpu.memory_space<vmem>>, vector<5x512xf32>
    tpu.vector_store %arg5[%c27, %c0_1], %1 {strides = array<i32>} : memref<32x512xf32, #tpu.memory_space<vmem>>, vector<5x512xf32>,
    %c0_2 = arith.constant 0 : index
    %c0_3 = arith.constant 0 : index
    %3 = vector.load %arg5[%c0_2, %c0_3] : memref<32x512xf32, #tpu.memory_space<vmem>>, vector<3x512xf32>
    tpu.vector_store %arg5[%c0_2, %c0_3], %0 {strides = array<i32>} : memref<32x512xf32, #tpu.memory_space<vmem>>, vector<3x512xf32>,
    %c511_i32 = arith.constant 511 : i32
    %4 = tpu.dynamic_rotate %0 by %c511_i32 dim 1 : vector<3x512xf32>, i32 -> vector<3x512xf32>
    %c3 = arith.constant 3 : index
    %c0_4 = arith.constant 0 : index
    %5 = vector.load %arg5[%c3, %c0_4] : memref<32x512xf32, #tpu.memory_space<vmem>>, vector<3x512xf32>
    tpu.vector_store %arg5[%c3, %c0_4], %4 {strides = array<i32>} : memref<32x512xf32, #tpu.memory_space<vmem>>, vector<3x512xf32>,
    %c510_i32 = arith.constant 510 : i32
    %6 = tpu.dynamic_rotate %0 by %c510_i32 dim 1 : vector<3x512xf32>, i32 -> vector<3x512xf32>
    %c6 = arith.constant 6 : index
    %c0_5 = arith.constant 0 : index
    %7 = vector.load %arg5[%c6, %c0_5] : memref<32x512xf32, #tpu.memory_space<vmem>>, vector<3x512xf32>
    tpu.vector_store %arg5[%c6, %c0_5], %6 {strides = array<i32>} : memref<32x512xf32, #tpu.memory_space<vmem>>, vector<3x512xf32>,
    %c496_i32 = arith.constant 496 : i32
    %8 = tpu.dynamic_rotate %0 by %c496_i32 dim 1 : vector<3x512xf32>, i32 -> vector<3x512xf32>
    %c9 = arith.constant 9 : index
    %c0_6 = arith.constant 0 : index
    %9 = vector.load %arg5[%c9, %c0_6] : memref<32x512xf32, #tpu.memory_space<vmem>>, vector<3x512xf32>
    tpu.vector_store %arg5[%c9, %c0_6], %8 {strides = array<i32>} : memref<32x512xf32, #tpu.memory_space<vmem>>, vector<3x512xf32>,
    %c495_i32 = arith.constant 495 : i32
    %10 = tpu.dynamic_rotate %0 by %c495_i32 dim 1 : vector<3x512xf32>, i32 -> vector<3x512xf32>
    %c12 = arith.constant 12 : index
    %c0_7 = arith.constant 0 : index
    %11 = vector.load %arg5[%c12, %c0_7] : memref<32x512xf32, #tpu.memory_space<vmem>>, vector<3x512xf32>
    tpu.vector_store %arg5[%c12, %c0_7], %10 {strides = array<i32>} : memref<32x512xf32, #tpu.memory_space<vmem>>, vector<3x512xf32>,
    %c494_i32 = arith.constant 494 : i32
    %12 = tpu.dynamic_rotate %0 by %c494_i32 dim 1 : vector<3x512xf32>, i32 -> vector<3x512xf32>
    %c15 = arith.constant 15 : index
    %c0_8 = arith.constant 0 : index
    %13 = vector.load %arg5[%c15, %c0_8] : memref<32x512xf32, #tpu.memory_space<vmem>>, vector<3x512xf32>
    tpu.vector_store %arg5[%c15, %c0_8], %12 {strides = array<i32>} : memref<32x512xf32, #tpu.memory_space<vmem>>, vector<3x512xf32>,
    %c480_i32 = arith.constant 480 : i32
    %14 = tpu.dynamic_rotate %0 by %c480_i32 dim 1 : vector<3x512xf32>, i32 -> vector<3x512xf32>
    %c18 = arith.constant 18 : index
    %c0_9 = arith.constant 0 : index
    %15 = vector.load %arg5[%c18, %c0_9] : memref<32x512xf32, #tpu.memory_space<vmem>>, vector<3x512xf32>
    tpu.vector_store %arg5[%c18, %c0_9], %14 {strides = array<i32>} : memref<32x512xf32, #tpu.memory_space<vmem>>, vector<3x512xf32>,
    %c479_i32 = arith.constant 479 : i32
    %16 = tpu.dynamic_rotate %0 by %c479_i32 dim 1 : vector<3x512xf32>, i32 -> vector<3x512xf32>
    %c21 = arith.constant 21 : index
    %c0_10 = arith.constant 0 : index
    %17 = vector.load %arg5[%c21, %c0_10] : memref<32x512xf32, #tpu.memory_space<vmem>>, vector<3x512xf32>
    tpu.vector_store %arg5[%c21, %c0_10], %16 {strides = array<i32>} : memref<32x512xf32, #tpu.memory_space<vmem>>, vector<3x512xf32>,
    %c478_i32 = arith.constant 478 : i32
    %18 = tpu.dynamic_rotate %0 by %c478_i32 dim 1 : vector<3x512xf32>, i32 -> vector<3x512xf32>
    %c24 = arith.constant 24 : index
    %c0_11 = arith.constant 0 : index
    %19 = vector.load %arg5[%c24, %c0_11] : memref<32x512xf32, #tpu.memory_space<vmem>>, vector<3x512xf32>
    tpu.vector_store %arg5[%c24, %c0_11], %18 {strides = array<i32>} : memref<32x512xf32, #tpu.memory_space<vmem>>, vector<3x512xf32>,
    %c0_12 = arith.constant 0 : index
    %c0_13 = arith.constant 0 : index
    %20 = vector.load %arg2[%c0_12, %c0_13] : memref<6x32xf32, #tpu.memory_space<vmem>>, vector<6x32xf32>
    %c0_14 = arith.constant 0 : index
    %c0_15 = arith.constant 0 : index
    %21 = vector.load %arg5[%c0_14, %c0_15] : memref<32x512xf32, #tpu.memory_space<vmem>>, vector<32x512xf32>
    %cst_16 = arith.constant dense<0.000000e+00> : vector<6x512xf32>
    %22 = tpu.matmul %20, %21, %cst_16 {dimension_numbers = #tpu.dot_dimension_numbers<[1], [0], [0], [1], [0, 0, 1, 1], [], []>} : vector<6x32xf32>, vector<32x512xf32>, vector<6x512xf32> -> vector<6x512xf32>
    %c0_17 = arith.constant 0 : index
    %c0_18 = arith.constant 0 : index
    %23 = vector.load %arg3[%c0_17, %c0_18] : memref<6x1xf32, #tpu.memory_space<vmem>>, vector<6x1xf32>
    %24 = vector.broadcast %23 : vector<6x1xf32> to vector<6x512xf32>
    %25 = arith.addf %22, %24 : vector<6x512xf32>
    %c0_19 = arith.constant 0 : index
    %c0_20 = arith.constant 0 : index
    %26 = vector.load %arg4[%c0_19, %c0_20] : memref<6x512xf32, #tpu.memory_space<vmem>>, vector<6x512xf32>
    tpu.vector_store %arg4[%c0_19, %c0_20], %25 {strides = array<i32>} : memref<6x512xf32, #tpu.memory_space<vmem>>, vector<6x512xf32>,
    return
  }
  func.func @transform_0(%arg0: i32) -> (i32, i32) {
    %c0_i32 = arith.constant 0 : i32
    %c0_i32_0 = arith.constant 0 : i32
    %c0_i32_1 = arith.constant 0 : i32
    return %c0_i32, %c0_i32_0 : i32, i32
  }
  func.func @transform_1(%arg0: i32) -> (i32, i32) {
    %c0_i32 = arith.constant 0 : i32
    %c0_i32_0 = arith.constant 0 : i32
    %c0_i32_1 = arith.constant 0 : i32
    return %c0_i32, %c0_i32_0 : i32, i32
  }
  func.func @transform_2(%arg0: i32) -> (i32, i32) {
    %c0_i32 = arith.constant 0 : i32
    %c0_i32_0 = arith.constant 0 : i32
    %c0_i32_1 = arith.constant 0 : i32
    return %c0_i32, %c0_i32_0 : i32, i32
  }
  func.func @transform_3(%arg0: i32) -> (i32, i32) {
    %c0_i32 = arith.constant 0 : i32
    %c0_i32_0 = arith.constant 0 : i32
    %c0_i32_1 = arith.constant 0 : i32
    return %c0_i32, %c0_i32_0 : i32, i32
  }
}

</mosaic_0001>

<bundles_post_ra>
// kernel: conv2d_pallas.1
= control target key start
LH: loop header
LB: loop body
LE: loop exit
PB: predicated region body
PF: predicated region fallthrough
CT: control target
= control target key end

     0   :  { %s452_s16 = smov 110   ;;  %s453_s17 = smov 96   ;;  %v454_v4 = vmov 0.0   ;;  %v461_v5 = vmov 0   ;;  %v38_v7 = vlaneseq  ;;  %vm283_vm8 = vcmask 261120   ;;  %s532_s0 = inlined_call_operand.vmem [shape: f32[3,512], index: 0, kind: input, shape index: {}]   ;;  %s533_s2 = inlined_call_operand.vmem [shape: f32[6,1], index: 2, kind: input, shape index: {}]   ;;  %s534_s1 = inlined_call_operand.vmem [shape: f32[6,32], index: 1, kind: input, shape index: {}]   ;;  %s535_s3 = inlined_call_operand.vmem [shape: f32[6,512], index: 3, kind: output, shape index: {}]  }
   0x1   :  { %v15_v0 = vld [vmem:[%s532_s0 + $0x8] sm:$0x77]  ;;  %v14_v1 = vld [vmem:[%s532_s0] sm:$0x77]  ;;  %17 = vst [vmem:[#allocation2 + $0x60] sm:$0xf8] %v454_v4  ;;  %351 = vmatprep.mubr.f32.mxu0 %v454_v4  ;;  %422 = vmatprep.mubr.f32.mxu1 %v454_v4 }
   0x2   :  { %156 = vrot.lane.b32.xlu1 %v15_v0, %s452_s16  ;;  %28 = vst [vmem:[#allocation2 + $0x68] sm:$0x7] %v15_v0  ;;  %152 = vrot.lane.b32.xlu0 %v14_v1, %s452_s16  ;;  %26 = vst [vmem:[#allocation2 + $0x30] sm:$0x7] %v14_v1  ;;  %v23_v2 = vcombine.high %v15_v0, %v15_v0  ;;  %v22_v3 = vcombine.high %v14_v1, %v14_v1  ;;  %s455_s0 = smov 95   ;;  %s456_s18 = smov 94  }
   0x3   :  { %16 = vst [vmem:[#allocation2 + $0x10] sm:$0xf8] %v454_v4  ;;  %18 = vst [vmem:[#allocation2 + $0x38] sm:$0xf8] %v454_v4  ;;  %s457_s19 = smov 126   ;;  %s458_s20 = smov 112   ;;  %449 = vset.pattern.permute.xlu0 %v461_v5 }
   0x4   :  { %29 = vst [vmem:[#allocation2 + $0x28] sm:$0x7] %v23_v2  ;;  %27 = vst [vmem:[#allocation2 + $0x48] sm:$0x7] %v22_v3  ;;  %s459_s21 = smov 111   ;;  %s460_s22 = smov 127  }
   0x5   :  { %19 = vst [vmem:[#allocation2 + $0x78] sm:$0xf8] %v454_v4  ;;  %v277_v6 = vld [vmem:[%s533_s2] sm:$0x3f]  ;;  %v491_v8 = vand.u32 127, %v38_v7 }
   0x6   :  { %158 = vrot.lane.b32.xlu1 %v23_v2, %s452_s16  ;;  %154 = vrot.lane.b32.xlu0 %v22_v3, %s452_s16 }
   0x7   :  { %vm160_vm0 = vcmp.lt.s32.totalorder %v491_v8, 110  ;;  %vm193_vm1 = vcmp.lt.s32.totalorder %v491_v8, 96  ;;  %vm222_vm2 = vcmp.lt.s32.totalorder %v491_v8, 95  ;;  %vm251_vm3 = vcmp.lt.s32.totalorder %v491_v8, 94 }
   0x8   :  { %vm69_vm4 = vcmp.lt.s32.totalorder %v491_v8, 126  ;;  %vm102_vm5 = vcmp.lt.s32.totalorder %v491_v8, 112  ;;  %vm131_vm6 = vcmp.lt.s32.totalorder %v491_v8, 111  ;;  %vm40_vm7 = vcmp.lt.s32.totalorder %v491_v8, 127 }
   0xa   :  { %187 = vrot.lane.b32.xlu1 %v22_v3, %s453_s17  ;;  %185 = vrot.lane.b32.xlu0 %v14_v1, %s453_s17 }
   0xe   :  { %191 = vrot.lane.b32.xlu1 %v23_v2, %s453_s17  ;;  %189 = vrot.lane.b32.xlu0 %v15_v0, %s453_s17 }
  0x12   :  { %216 = vrot.lane.b32.xlu1 %v22_v3, %s455_s0  ;;  %214 = vrot.lane.b32.xlu0 %v14_v1, %s455_s0 }
  0x16   :  { %220 = vrot.lane.b32.xlu1 %v23_v2, %s455_s0  ;;  %218 = vrot.lane.b32.xlu0 %v15_v0, %s455_s0 }
  0x1a   :  { %245 = vrot.lane.b32.xlu1 %v22_v3, %s456_s18  ;;  %243 = vrot.lane.b32.xlu0 %v14_v1, %s456_s18 }
  0x1e   :  { %249 = vrot.lane.b32.xlu1 %v23_v2, %s456_s18  ;;  %247 = vrot.lane.b32.xlu0 %v15_v0, %s456_s18 }
  0x22   :  { %63 = vrot.lane.b32.xlu1 %v22_v3, %s457_s19  ;;  %61 = vrot.lane.b32.xlu0 %v14_v1, %s457_s19 }
  0x26   :  { %67 = vrot.lane.b32.xlu1 %v23_v2, %s457_s19  ;;  %65 = vrot.lane.b32.xlu0 %v15_v0, %s457_s19 }
  0x2a   :  { %96 = vrot.lane.b32.xlu1 %v22_v3, %s458_s20  ;;  %94 = vrot.lane.b32.xlu0 %v14_v1, %s458_s20 }
  0x2e   :  { %100 = vrot.lane.b32.xlu1 %v23_v2, %s458_s20  ;;  %98 = vrot.lane.b32.xlu0 %v15_v0, %s458_s20 }
  0x32   :  { %125 = vrot.lane.b32.xlu1 %v22_v3, %s459_s21  ;;  %123 = vrot.lane.b32.xlu0 %v14_v1, %s459_s21 }
  0x36   :  { %129 = vrot.lane.b32.xlu1 %v23_v2, %s459_s21  ;;  %127 = vrot.lane.b32.xlu0 %v15_v0, %s459_s21 }
  0x3a   :  { %32 = vrot.lane.b32.xlu1 %v22_v3, %s460_s22  ;;  %30 = vrot.lane.b32.xlu0 %v14_v1, %s460_s22 }
  0x3e   :  { %36 = vrot.lane.b32.xlu1 %v23_v2, %s460_s22  ;;  %34 = vrot.lane.b32.xlu0 %v15_v0, %s460_s22 }
  0x42   :  { %280 = vperm.xlu0 %449, %v277_v6  }
  0x74   :  { %v157_v9 = vpop.permute.xlu1 %156  ;;  %v153_v10 = vpop.permute.xlu0 %152 }
  0x78   :  { %v159_v11 = vpop.permute.xlu1 %158  ;;  %v155_v12 = vpop.permute.xlu0 %154 }
  0x79   :  { %v161_v13 = vsel %vm160_vm0, %v157_v9, %v159_v11  ;;  %v164_v14 = vsel %vm160_vm0, %v159_v11, %v153_v10  ;;  %v162_v15 = vsel %vm160_vm0, %v155_v12, %v157_v9  ;;  %v163_v16 = vsel %vm160_vm0, %v153_v10, %v155_v12 }
  0x7a   :  { %v171_v17 = vrot.slane %v161_v13, 1  ;;  %v172_v18 = vrot.slane %v164_v14, 1  ;;  %v169_v19 = vrot.slane %v163_v16, 1  ;;  %v170_v20 = vrot.slane %v162_v15, 1 }
  0x7c   :  { %179 = vst [vmem:[#allocation2 + $0x58] ss:$28 sps:$4 sm:$0x83] %v171_v17   ;;  %180 = vst [vmem:[#allocation2 + $0x8] ss:$20 sps:$4 sm:$0x83] %v172_v18   ;;  %v188_v21 = vpop.permute.xlu1 %187  ;;  %v186_v22 = vpop.permute.xlu0 %185 }
  0x7d   :  { %177 = vst [vmem:[#allocation2 + $0x40] ss:$-28 sps:$4 sm:$0x83] %v169_v19   ;;  %178 = vst [vmem:[#allocation2 + $0x50] ss:$-76 sps:$4 sm:$0x83] %v170_v20   ;;  %v196_v23 = vsel %vm193_vm1, %v186_v22, %v188_v21 }
  0x7e   :  { %v202_v24 = vrot.slane %v196_v23, 6 }
  0x80   :  { %210 = vst [vmem:[#allocation2 + $0x40] sm:$0x1c] %v202_v24  ;;  %v192_v25 = vpop.permute.xlu1 %191  ;;  %v190_v26 = vpop.permute.xlu0 %189 }
  0x81   :  { %v197_v27 = vsel %vm193_vm1, %v192_v25, %v186_v22  ;;  %v194_v28 = vsel %vm193_vm1, %v190_v26, %v192_v25  ;;  %v195_v29 = vsel %vm193_vm1, %v188_v21, %v190_v26 }
  0x82   :  { %v205_v30 = vrot.slane %v197_v27, 6  ;;  %v203_v31 = vrot.slane %v195_v29, 6  ;;  %v204_v32 = vrot.slane %v194_v28, 6 }
  0x84   :  { %213 = vst [vmem:[#allocation2 + $0x8] sm:$0x1c] %v205_v30  ;;  %211 = vst [vmem:[#allocation2 + $0x50] sm:$0x1c] %v203_v31  ;;  %v217_v33 = vpop.permute.xlu1 %216  ;;  %v215_v34 = vpop.permute.xlu0 %214 }
  0x85   :  { %212 = vst [vmem:[#allocation2 + $0x58] sm:$0x1c] %v204_v32  ;;  %v225_v35 = vsel %vm222_vm2, %v215_v34, %v217_v33 }
  0x86   :  { %v231_v36 = vrot.slane %v225_v35, 3 }
  0x88   :  { %239 = vst [vmem:[#allocation2 + $0x40] sm:$0xe0] %v231_v36  ;;  %v221_v37 = vpop.permute.xlu1 %220  ;;  %v219_v38 = vpop.permute.xlu0 %218 }
  0x89   :  { %v226_v39 = vsel %vm222_vm2, %v221_v37, %v215_v34  ;;  %v223_v40 = vsel %vm222_vm2, %v219_v38, %v221_v37  ;;  %v224_v41 = vsel %vm222_vm2, %v217_v33, %v219_v38 }
  0x8a   :  { %v234_v42 = vrot.slane %v226_v39, 3  ;;  %v232_v43 = vrot.slane %v224_v41, 3  ;;  %v233_v44 = vrot.slane %v223_v40, 3 }
  0x8c   :  { %242 = vst [vmem:[#allocation2 + $0x8] sm:$0xe0] %v234_v42  ;;  %240 = vst [vmem:[#allocation2 + $0x50] sm:$0xe0] %v232_v43  ;;  %v246_v45 = vpop.permute.xlu1 %245  ;;  %v244_v46 = vpop.permute.xlu0 %243 }
  0x8d   :  { %241 = vst [vmem:[#allocation2 + $0x58] sm:$0xe0] %v233_v44  ;;  %v254_v47 = vsel %vm251_vm3, %v244_v46, %v246_v45 }
  0x8e   :  { %256 = vst [vmem:[#allocation2 + $0x10] sm:$0x7] %v254_v47 }
  0x8f   :  { %v269_v10 = vld [vmem:[#allocation2 + $0x40] sm:$0xff] }
  0x90   :  { %v250_v48 = vpop.permute.xlu1 %249  ;;  %v248_v49 = vpop.permute.xlu0 %247 }
  0x91   :  { %v255_v50 = vsel %vm251_vm3, %v250_v48, %v244_v46  ;;  %v252_v51 = vsel %vm251_vm3, %v248_v49, %v250_v48  ;;  %v253_v52 = vsel %vm251_vm3, %v246_v45, %v248_v49  ;;  %v260_v49 = vld [vmem:[%s534_s1] sm:$0x3f] }
  0x92   :  { %259 = vst [vmem:[#allocation2 + $0x78] sm:$0x7] %v255_v50  ;;  %257 = vst [vmem:[#allocation2 + $0x60] sm:$0x7] %v253_v52 }
  0x93   :  { %258 = vst [vmem:[#allocation2 + $0x38] sm:$0x7] %v252_v51  ;;  %v270_v5 = vld [vmem:[#allocation2 + $0x50] sm:$0xff]  ;;  %v272_v6 = vld [vmem:[#allocation2 + $0x8] sm:$0xff] }
  0x94   :  { %v64_v53 = vpop.permute.xlu1 %63  ;;  %v62_v54 = vpop.permute.xlu0 %61  ;;  %v271_v11 = vld [vmem:[#allocation2 + $0x58] sm:$0xff] }
  0x95   :  { %v72_v55 = vsel %vm69_vm4, %v62_v54, %v64_v53  ;;  %v273_v4 = vld [vmem:[#allocation2 + $0x10] sm:$0xff] }
  0x96   :  { %v78_v56 = vrot.slane %v72_v55, 2 }
  0x98   :  { %86 = vst [vmem:[#allocation2 + $0x20] ss:$20 sps:$4 sm:$0xc1] %v78_v56   ;;  %v68_v57 = vpop.permute.xlu1 %67  ;;  %v66_v58 = vpop.permute.xlu0 %65 }
  0x99   :  { %v73_v59 = vsel %vm69_vm4, %v68_v57, %v62_v54  ;;  %v70_v60 = vsel %vm69_vm4, %v66_v58, %v68_v57  ;;  %v71_v61 = vsel %vm69_vm4, %v64_v53, %v66_v58  ;;  %v274_v62 = vld [vmem:[#allocation2 + $0x60] sm:$0xff]  ;;  %v276_v63 = vld [vmem:[#allocation2 + $0x78] sm:$0xff] }
  0x9a   :  { %v275_v0 = vld [vmem:[#allocation2 + $0x38] sm:$0xff]  ;;  %v81_v1 = vrot.slane %v73_v59, 2  ;;  %v79_v2 = vrot.slane %v71_v61, 2  ;;  %v80_v3 = vrot.slane %v70_v60, 2  ;;  %311 = vmatprep.subr.mxu0 %v274_v62  ;;  %382 = vmatprep.subr.mxu1 %v276_v63 }
  0x9b   :  { %312 = vmatpush1.msra.mxu0 %v273_v4  ;;  %383 = vmatpush1.msra.mxu1 %v275_v0 }
  0x9c   :  { %89 = vst [vmem:[#allocation2 + $0x18] ss:$20 sps:$4 sm:$0xc1] %v81_v1   ;;  %87 = vst [vmem:[#allocation2] ss:$76 sps:$4 sm:$0xc1] %v79_v2   ;;  %v97_v7 = vpop.permute.xlu1 %96  ;;  %313 = vmatprep.subr.mxu0 %v270_v5  ;;  %384 = vmatprep.subr.mxu1 %v272_v6  ;;  %v95_v9 = vpop.permute.xlu0 %94 }
  0x9d   :  { %88 = vst [vmem:[#allocation2 + $0x70] ss:$-4 sps:$4 sm:$0xc1] %v80_v3   ;;  %v105_v12 = vsel %vm102_vm5, %v95_v9, %v97_v7  ;;  %314 = vmatpush1.msra.mxu0 %v269_v10  ;;  %385 = vmatpush1.msra.mxu1 %v271_v11 }
  0x9e   :  { %v111_v13 = vrot.slane %v105_v12, 7 }
  0xa0   :  { %119 = vst [vmem:[#allocation2 + $0x20] sm:$0xe] %v111_v13  ;;  %v101_v14 = vpop.permute.xlu1 %100  ;;  %v99_v15 = vpop.permute.xlu0 %98 }
  0xa1   :  { %v106_v16 = vsel %vm102_vm5, %v101_v14, %v95_v9  ;;  %v103_v17 = vsel %vm102_vm5, %v99_v15, %v101_v14  ;;  %v104_v18 = vsel %vm102_vm5, %v97_v7, %v99_v15 }
  0xa2   :  { %v114_v19 = vrot.slane %v106_v16, 7  ;;  %v112_v20 = vrot.slane %v104_v18, 7  ;;  %v113_v21 = vrot.slane %v103_v17, 7 }
  0xa4   :  { %122 = vst [vmem:[#allocation2 + $0x18] sm:$0xe] %v114_v19  ;;  %120 = vst [vmem:[#allocation2] sm:$0xe] %v112_v20  ;;  %v126_v22 = vpop.permute.xlu1 %125  ;;  %v124_v23 = vpop.permute.xlu0 %123 }
  0xa5   :  { %121 = vst [vmem:[#allocation2 + $0x70] sm:$0xe] %v113_v21  ;;  %v134_v24 = vsel %vm131_vm6, %v124_v23, %v126_v22 }
  0xa6   :  { %v140_v25 = vrot.slane %v134_v24, 4 }
  0xa8   :  { %148 = vst [vmem:[#allocation2 + $0x20] sm:$0x70] %v140_v25  ;;  %v130_v26 = vpop.permute.xlu1 %129  ;;  %v128_v27 = vpop.permute.xlu0 %127 }
  0xa9   :  { %v135_v28 = vsel %vm131_vm6, %v130_v26, %v124_v23  ;;  %v132_v29 = vsel %vm131_vm6, %v128_v27, %v130_v26  ;;  %v133_v30 = vsel %vm131_vm6, %v126_v22, %v128_v27 }
  0xaa   :  { %v143_v31 = vrot.slane %v135_v28, 4  ;;  %v141_v32 = vrot.slane %v133_v30, 4  ;;  %v142_v33 = vrot.slane %v132_v29, 4 }
  0xac   :  { %151 = vst [vmem:[#allocation2 + $0x18] sm:$0x70] %v143_v31  ;;  %149 = vst [vmem:[#allocation2] sm:$0x70] %v141_v32  ;;  %v33_v34 = vpop.permute.xlu1 %32  ;;  %v31_v35 = vpop.permute.xlu0 %30 }
  0xad   :  { %150 = vst [vmem:[#allocation2 + $0x70] sm:$0x70] %v142_v33  ;;  %v43_v36 = vsel %vm40_vm7, %v31_v35, %v33_v34 }
  0xae   :  { %v49_v37 = vrot.slane %v43_v36, 5 }
  0xaf   :  { %v265_v8 = vld [vmem:[#allocation2 + $0x20] sm:$0xff] }
  0xb0   :  { %57 = vst [vmem:[#allocation2 + $0x30] sm:$0x38] %v49_v37  ;;  %v37_v38 = vpop.permute.xlu1 %36  ;;  %v35_v39 = vpop.permute.xlu0 %34 }
  0xb1   :  { %v44_v40 = vsel %vm40_vm7, %v37_v38, %v31_v35  ;;  %v41_v41 = vsel %vm40_vm7, %v35_v39, %v37_v38  ;;  %v42_v42 = vsel %vm40_vm7, %v33_v34, %v35_v39 }
  0xb2   :  { %v52_v43 = vrot.slane %v44_v40, 5  ;;  %v50_v44 = vrot.slane %v42_v42, 5  ;;  %v51_v45 = vrot.slane %v41_v41, 5 }
  0xb3   :  { %v266_v46 = vld [vmem:[#allocation2] sm:$0xff]  ;;  %v268_v47 = vld [vmem:[#allocation2 + $0x18] sm:$0xff] }
  0xb4   :  { %v267_v48 = vld [vmem:[#allocation2 + $0x70] sm:$0xff]  ;;  %60 = vst [vmem:[#allocation2 + $0x28] sm:$0x38] %v52_v43  ;;  %58 = vst [vmem:[#allocation2 + $0x48] sm:$0x38] %v50_v44  ;;  %315 = vmatprep.subr.mxu0 %v266_v46  ;;  %386 = vmatprep.subr.mxu1 %v268_v47 }
  0xb5   :  { %59 = vst [vmem:[#allocation2 + $0x68] sm:$0x38] %v51_v45  ;;  %316 = vmatpush1.msra.mxu0 %v265_v8  ;;  %387 = vmatpush1.msra.mxu1 %v267_v48 }
  0xb7   :  { %v261_v53 = vld [vmem:[#allocation2 + $0x30] sm:$0xff] }
  0xbb   :  { %v262_v50 = vld [vmem:[#allocation2 + $0x48] sm:$0xff] }
  0xbc   :  { %v264_v51 = vld [vmem:[#allocation2 + $0x28] sm:$0xff]  ;;  %317 = vmatprep.subr.mxu0 %v262_v50 }
  0xbd   :  { %v263_v52 = vld [vmem:[#allocation2 + $0x68] sm:$0xff]  ;;  %388 = vmatprep.subr.mxu1 %v264_v51  ;;  %318 = vmatpush1.msra.mxu0 %v261_v53  ;;  %v281_v54 = vpop.permute.xlu0 %280 }
  0xbe   :  { %389 = vmatpush1.msra.mxu1 %v263_v52  ;;  %437 = vmatmul.mubr.msk.f32.vlgmr.msra.gmra.mxu0 %vm283_vm8, %v260_v49 }
  0xbf   :  { %438 = vmatmul.mubr.msk.f32.vlgmr.msra.gmra.mxu1 %vm283_vm8, %v260_v49 }
 0x17e   :  { %v353_v56 = vpop.f32.mrf.mxu0 }
 0x17f   :  { %v424_v55 = vpop.f32.mrf.mxu1  ;;  %v354_v58 = vadd.f32 %v353_v56, %v281_v54 }
 0x180   :  { %v425_v57 = vadd.f32 %v424_v55, %v281_v54  ;;  %v355_v59 = vpop.f32.mrf.mxu0 }
 0x181   :  { %v426_v60 = vpop.f32.mrf.mxu1  ;;  %429 = vst [vmem:[%s535_s3] sm:$0x3f] %v354_v58  ;;  %v356_v61 = vadd.f32 %v355_v59, %v281_v54 }
 0x182   :  { %431 = vst [vmem:[%s535_s3 + $0x10] sm:$0x3f] %v425_v57  ;;  %v427_v62 = vadd.f32 %v426_v60, %v281_v54 }
 0x183   :  { %430 = vst [vmem:[%s535_s3 + $0x8] sm:$0x3f] %v356_v61 }
 0x184   :  { %432 = vst [vmem:[%s535_s3 + $0x18] sm:$0x3f] %v427_v62 }

</bundles_post_ra>
